<compile_context>
chip_gen: v7x
topology: tpu7x:2x2x1
jax: 0.10.0
libtpu: 0.0.40
codegen_flags: <defaults>
</compile_context>

<pallas_src>
import jax
import jax.numpy as jnp
from jax import lax
from jax.experimental import pallas as pl
from jax.experimental.pallas import tpu as pltpu

d_model = 116
d_ff = 116
LN_EPS = 1e-5


def _round_up(n, m):
    return (n + m - 1) // m * m


# ------------------------------- kernel -------------------------------------
def ffn_kernel(x_ref, w1_ref, w2_ref, c_ref, out_ref):
    x = x_ref[...]                                    # (TM, d_model) f32
    c = c_ref[...]                                    # (4, d_model): b1,b2,g,beta
    b1 = c[0:1, :]
    b2 = c[1:2, :]
    g = c[2:3, :]
    beta = c[3:4, :]

    # Conv1d(k=1) -> ReLU -> Conv1d(k=1)  (per-position linear layers on MXU).
    h = jnp.dot(x, w1_ref[...], preferred_element_type=jnp.float32) + b1
    h = jnp.maximum(h, 0.0)
    y = jnp.dot(h, w2_ref[...], preferred_element_type=jnp.float32) + b2
    y = y + x                                         # residual

    # LayerNorm over the real d_model features, centered (two-pass) variance
    # exactly like torch.nn.LayerNorm (biased variance).
    mean = jnp.mean(y, axis=-1, keepdims=True)
    yc = y - mean
    var = jnp.mean(yc * yc, axis=-1, keepdims=True)
    out_ref[...] = yc * lax.rsqrt(var + LN_EPS) * g + beta


# ------------------------------- wrapper -------------------------------------
def poswise_ffn_pallas(x, params, *, row_tile=2048):
    """PoswiseFeedForwardNet forward.  x: (B, S, d_model) f32."""
    B, S, D = x.shape
    assert D == d_model
    assert d_ff == d_model  # required by the packed-constant layout below
    rows = B * S
    xf = x.reshape(rows, D)                           # free (contiguous)

    # Row tile: multiple of 8, <= row_tile, and such that the grid has >= 2
    # steps whenever possible (v7x megacore sharding; harmless on v5e/v6e).
    tm = max(8, min(row_tile, _round_up(pl.cdiv(rows, 2), 8)))
    grid = pl.cdiv(rows, tm)                          # partial last block is OK

    # Pack the four small per-feature vectors into one resident constant tile.
    consts = jnp.stack(
        [params["b1"], params["b2"], params["ln_g"], params["ln_b"]], axis=0
    ).astype(jnp.float32)                             # (4, d_model)

    out = pl.pallas_call(
        ffn_kernel,
        out_shape=jax.ShapeDtypeStruct((rows, D), jnp.float32),
        grid=(grid,),
        in_specs=[
            pl.BlockSpec((tm, D), lambda i: (i, 0)),              # x rows
            pl.BlockSpec((d_model, d_ff), lambda i: (0, 0)),      # W1 (resident)
            pl.BlockSpec((d_ff, d_model), lambda i: (0, 0)),      # W2 (resident)
            pl.BlockSpec((4, d_model), lambda i: (0, 0)),         # b1,b2,g,beta
        ],
        out_specs=pl.BlockSpec((tm, D), lambda i: (i, 0)),
        compiler_params=pltpu.CompilerParams(
            dimension_semantics=("parallel",),
            vmem_limit_bytes=48 * 1024 * 1024),
    )(xf, params["w1"], params["w2"], consts)

    return out.reshape(B, S, D)


# --------------------------- pure-JAX reference -------------------------------
def ffn_ref(x, w1, b1, w2, b2, gamma, beta):
    h = jnp.maximum(jnp.einsum("bsd,df->bsf", x, w1) + b1, 0.0)
    y = jnp.einsum("bsf,fd->bsd", h, w2) + b2 + x
    mean = jnp.mean(y, axis=-1, keepdims=True)
    var = jnp.mean(jnp.square(y - mean), axis=-1, keepdims=True)
    return (y - mean) * lax.rsqrt(var + LN_EPS) * gamma + beta


# --------------------------------- main ---------------------------------------
if __name__ == "__main__":
    key = jax.random.PRNGKey(0)
    kx, k1, k2, k3, k4 = jax.random.split(key, 5)

    B, S = 2, 16
    x = jax.random.normal(kx, (B, S, d_model), dtype=jnp.float32)

    # Conv1d(kernel_size=1) weights stored pre-transposed as (in, out):
    #   w1 == conv1.weight[:, :, 0].T ,  b1 == conv1.bias
    #   w2 == conv2.weight[:, :, 0].T ,  b2 == conv2.bias
    scale = 0.05
    params = dict(
        w1=scale * jax.random.normal(k1, (d_model, d_ff), dtype=jnp.float32),
        b1=scale * jax.random.normal(k2, (d_ff,), dtype=jnp.float32),
        w2=scale * jax.random.normal(k3, (d_ff, d_model), dtype=jnp.float32),
        b2=scale * jax.random.normal(k4, (d_model,), dtype=jnp.float32),
        ln_g=jnp.ones((d_model,), jnp.float32),
        ln_b=jnp.zeros((d_model,), jnp.float32),
    )

    y = jax.block_until_ready(poswise_ffn_pallas(x, params))
    assert y.shape == (B, S, d_model) and y.dtype == jnp.float32

    y_ref = ffn_ref(x, params["w1"], params["b1"], params["w2"], params["b2"],
                    params["ln_g"], params["ln_b"])
    max_err = float(jnp.max(jnp.abs(y - y_ref)))
    assert max_err < 2e-4, f"mismatch vs reference: {max_err}"

    print("KERNEL_OK")
</pallas_src>

<mosaic_0001>
module attributes {stable_mosaic.version = 11 : i64} {
  func.func @ffn_kernel(%arg0: i32, %arg1: memref<16x116xf32, #tpu.memory_space<vmem>>, %arg2: memref<116x116xf32, #tpu.memory_space<vmem>>, %arg3: memref<116x116xf32, #tpu.memory_space<vmem>>, %arg4: memref<4x116xf32, #tpu.memory_space<vmem>>, %arg5: memref<16x116xf32, #tpu.memory_space<vmem>>) attributes {dimension_semantics = [#tpu.dimension_semantics<parallel>], iteration_bounds = array<i64: 2>, scalar_prefetch = 0 : i64, scratch_operands = 0 : i64, tpu.core_type = #tpu.core_type<tc>, window_params = [{transform_indices = @transform_0, window_bounds = array<i64: 16, 116>}, {pipeline_mode = #tpu.pipeline_mode<synchronous>, transform_indices = @transform_1, window_bounds = array<i64: 116, 116>}, {pipeline_mode = #tpu.pipeline_mode<synchronous>, transform_indices = @transform_2, window_bounds = array<i64: 116, 116>}, {pipeline_mode = #tpu.pipeline_mode<synchronous>, transform_indices = @transform_3, window_bounds = array<i64: 4, 116>}, {transform_indices = @transform_4, window_bounds = array<i64: 16, 116>}]} {
    %c0 = arith.constant 0 : index
    %c0_0 = arith.constant 0 : index
    %0 = vector.load %arg1[%c0, %c0_0] : memref<16x116xf32, #tpu.memory_space<vmem>>, vector<16x116xf32>
    %c0_1 = arith.constant 0 : index
    %c0_2 = arith.constant 0 : index
    %1 = vector.load %arg4[%c0_1, %c0_2] : memref<4x116xf32, #tpu.memory_space<vmem>>, vector<4x116xf32>
    %2 = vector.extract_strided_slice %1 {offsets = [0, 0], sizes = [1, 116], strides = [1, 1]} : vector<4x116xf32> to vector<1x116xf32>
    %3 = vector.extract_strided_slice %1 {offsets = [1, 0], sizes = [1, 116], strides = [1, 1]} : vector<4x116xf32> to vector<1x116xf32>
    %4 = vector.extract_strided_slice %1 {offsets = [2, 0], sizes = [1, 116], strides = [1, 1]} : vector<4x116xf32> to vector<1x116xf32>
    %5 = vector.extract_strided_slice %1 {offsets = [3, 0], sizes = [1, 116], strides = [1, 1]} : vector<4x116xf32> to vector<1x116xf32>
    %c0_3 = arith.constant 0 : index
    %c0_4 = arith.constant 0 : index
    %6 = vector.load %arg2[%c0_3, %c0_4] : memref<116x116xf32, #tpu.memory_space<vmem>>, vector<116x116xf32>
    %cst = arith.constant dense<0.000000e+00> : vector<16x116xf32>
    %7 = tpu.matmul %0, %6, %cst {dimension_numbers = #tpu.dot_dimension_numbers<[1], [0], [0], [1], [0, 0, 1, 1], [], []>} : vector<16x116xf32>, vector<116x116xf32>, vector<16x116xf32> -> vector<16x116xf32>
    %8 = vector.broadcast %2 : vector<1x116xf32> to vector<16x116xf32>
    %9 = arith.addf %7, %8 : vector<16x116xf32>
    %cst_5 = arith.constant 0.000000e+00 : f32
    %10 = vector.broadcast %cst_5 : f32 to vector<16x116xf32>
    %11 = arith.maximumf %9, %10 : vector<16x116xf32>
    %c0_6 = arith.constant 0 : index
    %c0_7 = arith.constant 0 : index
    %12 = vector.load %arg3[%c0_6, %c0_7] : memref<116x116xf32, #tpu.memory_space<vmem>>, vector<116x116xf32>
    %cst_8 = arith.constant dense<0.000000e+00> : vector<16x116xf32>
    %13 = tpu.matmul %11, %12, %cst_8 {dimension_numbers = #tpu.dot_dimension_numbers<[1], [0], [0], [1], [0, 0, 1, 1], [], []>} : vector<16x116xf32>, vector<116x116xf32>, vector<16x116xf32> -> vector<16x116xf32>
    %14 = vector.broadcast %3 : vector<1x116xf32> to vector<16x116xf32>
    %15 = arith.addf %13, %14 : vector<16x116xf32>
    %16 = arith.addf %15, %0 : vector<16x116xf32>
    %cst_9 = arith.constant dense<0.000000e+00> : vector<16xf32>
    %17 = vector.multi_reduction <add>, %16, %cst_9 [1] : vector<16x116xf32> to vector<16xf32>
    %18 = vector.shape_cast %17 : vector<16xf32> to vector<16x1xf32>
    %cst_10 = arith.constant 1.160000e+02 : f32
    %19 = vector.broadcast %cst_10 : f32 to vector<16x1xf32>
    %20 = arith.divf %18, %19 : vector<16x1xf32>
    %21 = vector.broadcast %20 : vector<16x1xf32> to vector<16x116xf32>
    %22 = arith.subf %16, %21 : vector<16x116xf32>
    %23 = arith.mulf %22, %22 : vector<16x116xf32>
    %cst_11 = arith.constant dense<0.000000e+00> : vector<16xf32>
    %24 = vector.multi_reduction <add>, %23, %cst_11 [1] : vector<16x116xf32> to vector<16xf32>
    %25 = vector.shape_cast %24 : vector<16xf32> to vector<16x1xf32>
    %cst_12 = arith.constant 1.160000e+02 : f32
    %26 = vector.broadcast %cst_12 : f32 to vector<16x1xf32>
    %27 = arith.divf %25, %26 : vector<16x1xf32>
    %cst_13 = arith.constant 9.99999974E-6 : f32
    %28 = vector.broadcast %cst_13 : f32 to vector<16x1xf32>
    %29 = arith.addf %27, %28 : vector<16x1xf32>
    %30 = math.rsqrt %29 : vector<16x1xf32>
    %31 = vector.broadcast %30 : vector<16x1xf32> to vector<16x116xf32>
    %32 = arith.mulf %22, %31 : vector<16x116xf32>
    %33 = vector.broadcast %4 : vector<1x116xf32> to vector<16x116xf32>
    %34 = arith.mulf %32, %33 : vector<16x116xf32>
    %35 = vector.broadcast %5 : vector<1x116xf32> to vector<16x116xf32>
    %36 = arith.addf %34, %35 : vector<16x116xf32>
    %c0_14 = arith.constant 0 : index
    %c0_15 = arith.constant 0 : index
    %37 = vector.load %arg5[%c0_14, %c0_15] : memref<16x116xf32, #tpu.memory_space<vmem>>, vector<16x116xf32>
    tpu.vector_store %arg5[%c0_14, %c0_15], %36 {strides = array<i32>} : memref<16x116xf32, #tpu.memory_space<vmem>>, vector<16x116xf32>,
    return
  }
  func.func @transform_0(%arg0: i32) -> (i32, i32) {
    %c0_i32 = arith.constant 0 : i32
    %c0_i32_0 = arith.constant 0 : i32
    return %arg0, %c0_i32 : i32, i32
  }
  func.func @transform_1(%arg0: i32) -> (i32, i32) {
    %c0_i32 = arith.constant 0 : i32
    %c0_i32_0 = arith.constant 0 : i32
    %c0_i32_1 = arith.constant 0 : i32
    return %c0_i32, %c0_i32_0 : i32, i32
  }
  func.func @transform_2(%arg0: i32) -> (i32, i32) {
    %c0_i32 = arith.constant 0 : i32
    %c0_i32_0 = arith.constant 0 : i32
    %c0_i32_1 = arith.constant 0 : i32
    return %c0_i32, %c0_i32_0 : i32, i32
  }
  func.func @transform_3(%arg0: i32) -> (i32, i32) {
    %c0_i32 = arith.constant 0 : i32
    %c0_i32_0 = arith.constant 0 : i32
    %c0_i32_1 = arith.constant 0 : i32
    return %c0_i32, %c0_i32_0 : i32, i32
  }
  func.func @transform_4(%arg0: i32) -> (i32, i32) {
    %c0_i32 = arith.constant 0 : i32
    %c0_i32_0 = arith.constant 0 : i32
    return %arg0, %c0_i32 : i32, i32
  }
}

</mosaic_0001>

<bundles_post_ra>
// kernel: tpu_custom_call.1
= control target key start
LH: loop header
LB: loop body
LE: loop exit
PB: predicated region body
PF: predicated region fallthrough
CT: control target
= control target key end

     0   :  { %9 = vsyncpa [#allocation3], 0  ;;  %s1329_s0 = inlined_call_operand.hbm [shape: f32[32,116], index: 0, kind: input, shape index: {}]   ;;  %s1330_s1 = inlined_call_operand.hbm [shape: f32[116,116], index: 1, kind: input, shape index: {}]   ;;  %s1331_s2 = inlined_call_operand.hbm [shape: f32[116,116], index: 2, kind: input, shape index: {}]   ;;  %s1332_s3 = inlined_call_operand.vmem [shape: f32[4,116], index: 3, kind: input, shape index: {}]   ;;  %s1333_s4 = inlined_call_operand.hbm [shape: f32[32,116], index: 4, kind: output, shape index: {}]  }
   0x1   :  { %11 = vsyncpa [#allocation3 + $0x1], 0 }
   0x2   :  { %12 = vsyncpa [#allocation6], 0 }
   0x3   :  { %13 = vsyncpa [#allocation4], 0 }
   0x4   :  { %15 = vsyncpa [#allocation4 + $0x1], 0  ;;  %s1057_s15 = smov 0   ;;  %s1059_s16 = smov 0  }
   0x5   :  { %s1061_s17 = smov 0   ;;  %s1063_s18 = smov 0  }
   0x6 LB: > { %s1078_s19 = sadd.s32 4294967295, %s1022_s18   ;;  %s609_s20 = sadd.s32 4294967294, %s1022_s18   ;;  %s1022_s18 = sphi %s1063_s18, %s1353_s18   ;;  %s1018_s17 = sphi %s1061_s17, %s1352_s17   ;;  %s1014_s16 = sphi %s1059_s16, %s1351_s16   ;;  %s1010_s15 = sphi %s1057_s15, %s1350_s15  }
   0x7   : > { %p41_p0 = scmp.ne.s32.totalorder %s1014_s16, %s1010_s15  ;;  %p1334_p1 = scmp.eq.s32.totalorder %s1078_s19, 0 }
   0x8   : > { %p134_p3 = scmp.eq.s32.totalorder %s609_s20, 1  ;;  %p610_p5 = scmp.ge.s32.totalorder %s1022_s18, 1 }
   0x9   : > { %p1087_p4 = por %p1334_p1, %p41_p0  ;;  %p141_p7 = scmp.lt.s32.totalorder %s1022_s18, 3 }
   0xa   : > { %p1092_p6 = por %p134_p3, %p41_p0  ;;  %s1024_s24 = smov [#allocation5]  }
   0xb   : > { %s1337_s21 = scalar_select %p1087_p4, 1, 0 }
   0xc   : > { %s1338_s22 = scalar_select %p1092_p6, 1, 0 }
   0xd   : > { %p1097_p8 = pnand %p610_p5, %p141_p7  ;;  %s153_s25 = sshll.u32 %s1024_s24, 4  ;;  %s1101_s25 = int_to_ptr.vmem [resolvable:$true] %s153_s25 }
   0xe   : > { %s1025_s27 = smov [#allocation7]   ;;  %s866_s5 = scalar_lea.hbm %s1330_s1, 1920 }
   0xf   : > { %p803_p9 = pneg %p1097_p8  ;;  %s166_s28 = sshll.u32 %s1025_s27, 4  ;;  %s1112_s28 = int_to_ptr.vmem [resolvable:$true] %s166_s28 }
  0x10   : > { %p867_p12 = scmp.ne.s32.totalorder %s1330_s1, %s866_s5  ;;  %p873_p5 = scmp.lt.u32.totalorder %s866_s5, %s1330_s1 }
  0x11   : > { %p1108_p11 = pnand %p803_p9, %p1334_p1 }
  0x13   : > { %p868_p13 = pneg %p1108_p11 }
  0x15   : > { %p869_p0 = pnand %p868_p13, %p867_p12 }
  0x17   : > { %p870_p3 = pneg %p869_p0 }
  0x19   : > { %p875_p7 = pnand %p873_p5, %p870_p3 }
  0x1b   : > { %878 = shalt.err (!%p875_p7)
}
  0x1c   : > { %s879_s10 = scalar_lea.vmem %s1101_s25, 1920  ;;  %p887_p2 = scmp.lt.s32.totalorder %s1101_s25, %s1101_s25 }
  0x1d   : > { %p880_p9 = scmp.ne.s32.totalorder %s1101_s25, %s879_s10  ;;  %p888_p12 = scmp.lt.s32.totalorder %s879_s10, %s879_s10 }
  0x1f   : > { %p882_p10 = pnand %p880_p9, %p868_p13  ;;  %p889_p0 = por %p888_p12, %p887_p2 }
  0x21   : > { %p883_p1 = pneg %p882_p10 }
  0x23   : > { %p890_p6 = pnand %p889_p0, %p883_p1 }
  0x25   : > { %893 = shalt.err (!%p890_p6)
}
  0x26   : > { %s1026_s11 = smov 128   ;;  %s1027_s12 = smov 8  }
  0x27   : > { %806 = dma.hbm_to_vmem [thread:$0]  (!%p1108_p11), %s1330_s1, 1920, %s1101_s25, [#allocation6], %s1026_s11, %s1026_s11, %s1027_s12  }
  0x28   : > { %s894_s27 = scalar_lea.hbm %s1331_s2, 1920 }
  0x29   : > { %p895_p1 = scmp.ne.s32.totalorder %s1331_s2, %s894_s27  ;;  %p901_p10 = scmp.lt.u32.totalorder %s894_s27, %s1331_s2 }
  0x2b   : > { %p897_p2 = pnand %p895_p1, %p868_p13 }
  0x2d   : > { %p898_p6 = pneg %p897_p2 }
  0x2f   : > { %p903_p3 = pnand %p901_p10, %p898_p6 }
  0x31   : > { %906 = shalt.err (!%p903_p3)
}
  0x32   : > { %s907_s25 = scalar_lea.vmem %s1112_s28, 1920  ;;  %p915_p12 = scmp.lt.s32.totalorder %s1112_s28, %s1112_s28 }
  0x33   : > { %p908_p5 = scmp.ne.s32.totalorder %s1112_s28, %s907_s25  ;;  %p916_p0 = scmp.lt.s32.totalorder %s907_s25, %s907_s25 }
  0x35   : > { %p910_p7 = pnand %p908_p5, %p868_p13  ;;  %p917_p1 = por %p916_p0, %p915_p12 }
  0x37   : > { %p911_p9 = pneg %p910_p7 }
  0x39   : > { %p918_p2 = pnand %p917_p1, %p911_p9 }
  0x3b   : > { %921 = shalt.err (!%p918_p2)
}
  0x3c   : > { %809 = dma.hbm_to_vmem [thread:$0]  (!%p1108_p11), %s1331_s2, 1920, %s1112_s28, [#allocation6], %s1026_s11, %s1026_s11, %s1027_s12  }
  0x3d   : > { %s1173_s26 = sadd.s32 1, %s1022_s18   ;;  %s28_s9 = sadd.s32 1, %s1018_s17 }
  0x3e   : > { %s25_s10 = ssub.s32 %s1022_s18, %s1173_s26  ;;  %p35_p13 = scmp.ne.s32.totalorder %s1018_s17, %s1014_s16 }
  0x3f   : > { %p26_p6 = scmp.eq.s32.totalorder %s25_s10, 0  ;;  %p36_p10 = scmp.eq.s32.totalorder %s1022_s18, 0 }
  0x40   : > { %p1341_p3 = scmp.eq.s32.totalorder %s1078_s19, 1  ;;  %p820_p7 = scmp.lt.s32.totalorder %s1022_s18, 2 }
  0x41   : > { %s1189_s14 = scalar_select %p26_p6, %s1018_s17, %s28_s9  }
  0x42   : > { %p1183_p5 = por %p1341_p3, %p35_p13  ;;  %p37_p9 = por %p36_p10, %p35_p13 }
  0x43   : > { %s183_s20 = sand.u32 1, %s1018_s17   ;;  %s633_s28 = sshll.u32 %s1022_s18, 8 }
  0x44   : > { %s1342_s13 = scalar_select %p1183_p5, 1, 0 }
  0x45   : > { %s614_s24 = sshll.u32 %s183_s20, 4  ;;  %s1196_s30 = scalar_lea.hbm %s1329_s0, %s633_s28 }
  0x46   : > { %s187_s5 = scalar_lea.vmem [#allocation2], %s614_s24  ;;  %p1200_p11 = pnand %p820_p7, %p37_p9 }
  0x47   : > { %s194_s6 = sshll.u32 %s187_s5, 4  ;;  %s1204_s7 = scalar_lea.sflag [#allocation3], %s183_s20  ;;  %s1198_s6 = int_to_ptr.vmem [resolvable:$true] %s194_s6 }
  0x48   : > { %s922_s8 = scalar_lea.hbm %s1196_s30, 256  ;;  %p924_p0 = pneg %p1200_p11 }
  0x49   : > { %p923_p12 = scmp.ne.s32.totalorder %s1196_s30, %s922_s8  ;;  %s927_s24 = scalar_lea.hbm %s1329_s0, 512 }
  0x4a   : > { %p928_p13 = scmp.lt.u32.totalorder %s1196_s30, %s1329_s0  ;;  %p929_p6 = scmp.lt.u32.totalorder %s927_s24, %s922_s8 }
  0x4b   : > { %p925_p1 = pnand %p924_p0, %p923_p12  ;;  %p931_p3 = scmp.lt.u32.totalorder %s922_s8, %s1196_s30 }
  0x4c   : > { %p930_p10 = por %p929_p6, %p928_p13 }
  0x4d   : > { %p926_p2 = pneg %p925_p1 }
  0x4e   : > { %p932_p7 = por %p931_p3, %p930_p10 }
  0x50   : > { %p933_p9 = pnand %p932_p7, %p926_p2 }
  0x52   : > { %936 = shalt.err (!%p933_p9)
}
  0x53   : > { %s937_s20 = scalar_lea.vmem %s1198_s6, 256  ;;  %s1028_s29 = smov [#allocation2]  }
  0x54   : > { %p938_p12 = scmp.ne.s32.totalorder %s1198_s6, %s937_s20  ;;  %s942_s5 = sshll.u32 %s1028_s29, 4  ;;  %s943_s5 = int_to_ptr.vmem [resolvable:$false] %s942_s5 }
  0x55   : > { %s944_s9 = scalar_lea.vmem %s943_s5, 512  ;;  %p945_p4 = scmp.lt.s32.totalorder %s1198_s6, %s943_s5 }
  0x56   : > { %p940_p1 = pnand %p938_p12, %p924_p0  ;;  %p946_p13 = scmp.lt.s32.totalorder %s944_s9, %s937_s20 }
  0x58   : > { %p941_p5 = pneg %p940_p1  ;;  %p947_p6 = por %p946_p13, %p945_p4 }
  0x5a   : > { %p948_p10 = pnand %p947_p6, %p941_p5 }
  0x5c   : > { %951 = shalt.err (!%p948_p10)
}
  0x5d   : > { %813 = dma.hbm_to_vmem [thread:$0]  (!%p1200_p11), %s1196_s30, 256, %s1198_s6, %s1204_s7, %s1026_s11, %s1026_s11, %s1027_s12  }
  0x5e   : > { %206 = sbr.rel (%p1097_p8) target bundleno = 905 (0x389), region = 36  ;;  %s1238_s8 = sand.u32 (!%p1097_p8), 1, %s1014_s16  }
  0x5f   : > { %s618_s10 = sshll.u32 (!%p1097_p8), %s1238_s8, 4  ;;  %s209_s24 = scalar_lea.sflag (!%p1097_p8), [#allocation3], %s1238_s8 }
  0x60   : > { %s1244_s25 = scalar_lea.vmem (!%p1097_p8), [#allocation2], %s618_s10  ;;  %p1344_p4 = scmp.ne.s32.totalorder (!%p1097_p8), %s1337_s21, 0 }
  0x65   : > { %997 = dma.done.wait (%p1344_p4), %s209_s24, 256  }
  0x66   : > { %999 = vsyncadd (%p1344_p4), %s209_s24, 4294967040  ;;  %p1345_p5 = scmp.eq.s32.totalorder %s1078_s19, 0 }
  0x68   : > { %1001 = dma.done.wait (%p1345_p5), [#allocation6], 3840   ;;  %p1346_p8 = pmov %p1345_p5 }
  0x69   : > { %v250_v0 = vld [vmem:[#allocation5] sm:$0xff]  ;;  %v251_v1 = vld [vmem:[#allocation5 + $0x8] sm:$0xff]  ;;  %v252_v2 = vld [vmem:[#allocation5 + $0x10] sm:$0xff]  ;;  %vm269_vm0 = vcmask 949248   ;;  %vm276_vm1 = vcmask 1043456   ;;  %v265_v46 = vlaneseq  ;;  %s634_s11 = sshll.u32 %s1078_s19, 8 }
  0x6a   : > { %1003 = vsyncadd (%p1346_p8), [#allocation6], 4294963456  ;;  %v735_v3 = vpack.c.bf16 %v251_v1, %v250_v0  ;;  %v253_v4 = vld [vmem:[#allocation5 + $0x18] sm:$0xff]  ;;  %v254_v6 = vld [vmem:[#allocation5 + $0x20] sm:$0xff]  ;;  %s244_s12 = scalar_lea.vmem [#allocation8], %s618_s10  ;;  %s1282_s28 = scalar_lea.hbm %s1333_s4, %s634_s11 }
  0x6b   : > { %v739_v5 = vpack.c.bf16 %v253_v4, %v252_v2  ;;  %v255_v7 = vld [vmem:[#allocation5 + $0x28] sm:$0xff]  ;;  %v256_v8 = vld [vmem:[#allocation5 + $0x30] sm:$0xff]  ;;  %v257_v10 = vld [vmem:[#allocation5 + $0x38] sm:$0xff]  ;;  %v266_v47 = vshrl.u32 %v265_v46, 7  ;;  %s517_s30 = sshll.u32 %s244_s12, 4  ;;  %s504_s19 = scalar_lea.sflag [#allocation4], %s1238_s8  ;;  %s1284_s30 = int_to_ptr.vmem [resolvable:$true] %s517_s30 }
  0x6c   : > { %736 = vmatprep.subr.bf16.mxu0 %v735_v3  ;;  %v743_v9 = vpack.c.bf16 %v255_v7, %v254_v6  ;;  %v1255_v11 = vld [vmem:[%s1244_s25] sm:$0xff]  ;;  %v357_v12 = vld [vmem:[#allocation7] sm:$0xff]  ;;  %v359_v14 = vld [vmem:[#allocation7 + $0x10] sm:$0xff]  ;;  %v747_v20 = vpack.c.bf16 %v257_v10, %v256_v8  ;;  %s952_s27 = scalar_lea.vmem %s1284_s30, 256  ;;  %p1347_p0 = scmp.ne.s32.totalorder %s1342_s13, 0 }
  0x6d   : > { %738 = vmatpush3.bf16.msra.mxu0 %v735_v3  ;;  %699 = vmatprep.mubr.msk.f32.mxu0 %vm269_vm0, %v1255_v11  ;;  %v358_v13 = vld [vmem:[#allocation7 + $0x8] sm:$0xff]  ;;  %v360_v15 = vld [vmem:[#allocation7 + $0x18] sm:$0xff]  ;;  %v361_v18 = vld [vmem:[#allocation7 + $0x20] sm:$0xff]  ;;  %v267_v48 = vsub.s32 0, %v266_v47  ;;  %v374_v57 = vsub.s32 1, %v266_v47  ;;  %p953_p11 = scmp.ne.s32.totalorder %s1284_s30, %s952_s27  ;;  %s1029_s20 = smov [#allocation8]  }
  0x6e   : > { %740 = vmatprep.subr.bf16.mxu0 %v739_v5  ;;  %v763_v16 = vpack.c.bf16 %v358_v13, %v357_v12  ;;  %v767_v17 = vpack.c.bf16 %v360_v15, %v359_v14  ;;  %v362_v19 = vld [vmem:[#allocation7 + $0x28] sm:$0xff]  ;;  %v259_v22 = vld [vmem:[#allocation5 + $0x48] sm:$0xff]  ;;  %v364_v25 = vld [vmem:[#allocation7 + $0x38] sm:$0xff]  ;;  %s956_s29 = sshll.u32 %s1029_s20, 4  ;;  %s957_s29 = int_to_ptr.vmem [resolvable:$false] %s956_s29 }
  0x6f   : > { %v258_v21 = vld [vmem:[#allocation5 + $0x40] sm:$0xff]  ;;  %v771_v23 = vpack.c.bf16 %v362_v19, %v361_v18  ;;  %v363_v24 = vld [vmem:[#allocation7 + $0x30] sm:$0xff]  ;;  %v260_v27 = vld [vmem:[#allocation5 + $0x50] sm:$0xff]  ;;  %v491_v19 = vsub.s32 2, %v266_v47  ;;  %p954_p2 = pnand %p953_p11, %p1347_p0  ;;  %s958_s5 = scalar_lea.vmem %s957_s29, 512 }
  0x70   : > { %764 = vmatprep.subr.bf16.mxu1 %v763_v16  ;;  %v751_v26 = vpack.c.bf16 %v259_v22, %v258_v21  ;;  %v261_v28 = vld [vmem:[#allocation5 + $0x58] sm:$0xff]  ;;  %v775_v29 = vpack.c.bf16 %v364_v25, %v363_v24  ;;  %v366_v31 = vld [vmem:[#allocation7 + $0x48] sm:$0xff]  ;;  %v263_v34 = vld [vmem:[#allocation5 + $0x68] sm:$0xff]  ;;  %p959_p7 = scmp.lt.s32.totalorder %s1284_s30, %s957_s29  ;;  %p960_p9 = scmp.lt.s32.totalorder %s958_s5, %s952_s27 }
  0x71   : > { %742 = vmatpush3.bf16.msra.mxu0 %v739_v5  ;;  %766 = vmatpush3.bf16.msra.mxu1 %v763_v16  ;;  %v365_v30 = vld [vmem:[#allocation7 + $0x40] sm:$0xff]  ;;  %v755_v32 = vpack.c.bf16 %v261_v28, %v260_v27  ;;  %v262_v33 = vld [vmem:[#allocation5 + $0x60] sm:$0xff]  ;;  %v367_v36 = vld [vmem:[#allocation7 + $0x50] sm:$0xff]  ;;  %p955_p3 = pneg %p954_p2 }
  0x72   : > { %744 = vmatprep.subr.bf16.mxu0 %v743_v9  ;;  %768 = vmatprep.subr.bf16.mxu1 %v767_v17  ;;  %v779_v35 = vpack.c.bf16 %v366_v31, %v365_v30  ;;  %v368_v37 = vld [vmem:[#allocation7 + $0x58] sm:$0xff]  ;;  %v759_v38 = vpack.c.bf16 %v263_v34, %v262_v33  ;;  %v248_v41 = vld [vmem:[%s1244_s25 + $0x8] sm:$0xff]  ;;  %v370_v43 = vld [vmem:[#allocation7 + $0x68] sm:$0xff]  ;;  %p961_p12 = por %p960_p9, %p959_p7 }
  0x73   : > { %v783_v39 = vpack.c.bf16 %v368_v37, %v367_v36  ;;  %v264_v40 = vld [vmem:[#allocation5 + $0x70] sm:$0xf]  ;;  %v369_v42 = vld [vmem:[#allocation7 + $0x60] sm:$0xff]  ;;  %v371_v45 = vld [vmem:[#allocation7 + $0x70] sm:$0xf] }
  0x74   : > { %v787_v44 = vpack.c.bf16 %v370_v43, %v369_v42  ;;  %v249_v49 = vld [vmem:[%s1332_s3] sm:$0xf]  ;;  %p962_p1 = pnand %p961_p12, %p955_p3 }
  0x75   : > { %746 = vmatpush3.bf16.msra.mxu0 %v743_v9  ;;  %770 = vmatpush3.bf16.msra.mxu1 %v767_v17  ;;  %v268_v50 = vrot.slane %v249_v49, %v267_v48  ;;  %v375_v58 = vrot.slane %v249_v49, %v374_v57  ;;  %v492_v21 = vrot.slane %v249_v49, %v491_v19 }
  0x76   : > { %748 = vmatprep.subr.bf16.mxu0 %v747_v20  ;;  %772 = vmatprep.subr.bf16.mxu1 %v771_v23 }
  0x79   : > { %750 = vmatpush3.bf16.msra.mxu0 %v747_v20  ;;  %774 = vmatpush3.bf16.msra.mxu1 %v771_v23  ;;  %v497_v20 = vsub.s32 3, %v266_v47 }
  0x7a   : > { %752 = vmatprep.subr.bf16.mxu0 %v751_v26  ;;  %776 = vmatprep.subr.bf16.mxu1 %v775_v29 }
  0x7b   : > { %v498_v23 = vrot.slane %v249_v49, %v497_v20 }
  0x7d   : > { %754 = vmatpush3.bf16.msra.mxu0 %v751_v26  ;;  %778 = vmatpush3.bf16.msra.mxu1 %v775_v29 }
  0x7e   : > { %756 = vmatprep.subr.bf16.mxu0 %v755_v32  ;;  %780 = vmatprep.subr.bf16.mxu1 %v779_v35 }
  0x81   : > { %758 = vmatpush3.bf16.msra.mxu0 %v755_v32  ;;  %782 = vmatpush3.bf16.msra.mxu1 %v779_v35 }
  0x82   : > { %760 = vmatprep.subr.bf16.mxu0 %v759_v38  ;;  %784 = vmatprep.subr.bf16.mxu1 %v783_v39 }
  0x85   : > { %762 = vmatpush3.bf16.msra.mxu0 %v759_v38  ;;  %786 = vmatpush3.bf16.msra.mxu1 %v783_v39 }
  0x86   : > { %697 = vmatprep.subr.msk.mxu0 %vm276_vm1, %v264_v40  ;;  %788 = vmatprep.subr.bf16.mxu1 %v787_v44 }
  0x89   : > { %698 = vmatpush3.msk.msra.mxu0 %vm276_vm1, %v264_v40  ;;  %790 = vmatpush3.bf16.msra.mxu1 %v787_v44 }
  0x8a   : > { %700 = vmatmul.mubr.msk.f32.vlgmr.msra.gmra.mrb[0].mxu0 %vm269_vm0, %v248_v41  ;;  %730 = vmatprep.subr.msk.mxu1 %vm276_vm1, %v371_v45 }
  0x8d   : > { %731 = vmatpush3.msk.msra.mxu1 %vm276_vm1, %v371_v45 }
 0x15d   : > { %v701_v51 = vpop.f32.mrb[0].mxu0 }
 0x15e   : > { %v352_v52 = vadd.f32 %v701_v51, %v268_v50  ;;  %v346_v53 = vpop.f32.mrb[1].mxu0 }
 0x15f   : > { %v347_v54 = vadd.f32 %v346_v53, %v268_v50 }
 0x160   : > { %v356_v56 = vmax.f32 %v352_v52, 0.0 }
 0x161   : > { %v355_v55 = vmax.f32 %v347_v54, 0.0 }
 0x163   : > { %732 = vmatprep.mubr.msk.f32.mxu1 %vm269_vm0, %v355_v55 }
 0x164   : > { %733 = vmatmul.mubr.msk.f32.vlgmr.msra.gmra.mrb[0].mxu1 %vm269_vm0, %v356_v56 }
 0x237   : > { %v734_v59 = vpop.f32.mrb[0].mxu1 }
 0x238   : > { %v451_v60 = vpop.f32.mrb[1].mxu1  ;;  %v457_v61 = vadd.f32 %v734_v59, %v375_v58 }
 0x239   : > { %v452_v62 = vadd.f32 %v451_v60, %v375_v58 }
 0x23a   : > { %v461_v1 = vadd.f32 %v457_v61, %v248_v41 }
 0x23b   : > { %v460_v63 = vadd.f32 %v452_v62, %v1255_v11 }
 0x23c   : > { %v465_v2 = vsel %vm269_vm0, %v461_v1, 0.0 }
 0x23d   : > { %v462_v0 = vsel %vm269_vm0, %v460_v63, 0.0 }
 0x23e   : > { %463 = vadd.xlane.f32.xlu0 %v462_v0 }
 0x242   : > { %466 = vadd.xlane.f32.xlu0 %v465_v2 }
 0x2cb   : > { %v464_v3 = vpop.xlane.xlu0 %463 }
 0x2cc   : > { %v469_v4 = vmul.f32 0.00862069, %v464_v3 }
 0x2ce   : > { %v471_v5 = vsub.f32 %v460_v63, %v469_v4 }
 0x2cf   : > { %v467_v6 = vpop.xlane.xlu0 %466 }
 0x2d0   : > { %v470_v7 = vmul.f32 0.00862069, %v467_v6  ;;  %v473_v8 = vmul.f32 %v471_v5, %v471_v5 }
 0x2d2   : > { %v472_v9 = vsub.f32 %v461_v1, %v470_v7  ;;  %v475_v10 = vsel %vm269_vm0, %v473_v8, 0.0 }
 0x2d3   : > { %476 = vadd.xlane.f32.xlu1 %v475_v10 }
 0x2d4   : > { %v474_v12 = vmul.f32 %v472_v9, %v472_v9 }
 0x2d6   : > { %v478_v11 = vsel %vm269_vm0, %v474_v12, 0.0 }
 0x2d7   : > { %479 = vadd.xlane.f32.xlu1 %v478_v11 }
 0x360   : > { %v477_v13 = vpop.xlane.xlu1 %476 }
 0x361   : > { %v481_v14 = vmul.f32 0.00862069, %v477_v13 }
 0x363   : > { %v483_v15 = vadd.f32 1e-05, %v481_v14 }
 0x364   : > { %v480_v16 = vpop.xlane.xlu1 %479 }
 0x365   : > { %862 = vrsqrt.f32 %v483_v15  ;;  %v482_v17 = vmul.f32 0.00862069, %v480_v16 }
 0x367   : > { %v484_v18 = vadd.f32 1e-05, %v482_v17 }
 0x369   : > { %864 = vrsqrt.f32 %v484_v18 }
 0x36f   : > { %v863_v22 = vpop.eup %862 }
 0x370   : > { %v487_v24 = vmul.f32 %v863_v22, %v471_v5 }
 0x372   : > { %v493_v25 = vmul.f32 %v492_v21, %v487_v24 }
 0x373   : > { %v865_v26 = vpop.eup %864 }
 0x374   : > { %v499_v27 = vadd.f32 %v498_v23, %v493_v25  ;;  %v488_v28 = vmul.f32 %v865_v26, %v472_v9 }
 0x376   : > { %v494_v29 = vmul.f32 %v492_v21, %v488_v28  ;;  %501 = vst.msk [vmem:[%s244_s12] sm:$0xff] %vm269_vm0, %v499_v27 }
 0x378   : > { %v500_v30 = vadd.f32 %v498_v23, %v494_v29 }
 0x37a   : > { %502 = vst.msk [vmem:[%s244_s12 + $0x8] sm:$0xff] %vm269_vm0, %v500_v30 }
 0x37b   : > { %965 = shalt.err (!%p962_p1)
}
 0x37c   : > { %s966_s9 = scalar_lea.hbm %s1282_s28, 256  ;;  %s970_s25 = scalar_lea.hbm %s1333_s4, 512 }
 0x37d   : > { %p967_p13 = scmp.ne.s32.totalorder %s1282_s28, %s966_s9  ;;  %p971_p4 = scmp.lt.u32.totalorder %s1282_s28, %s1333_s4 }
 0x37e   : > { %p972_p5 = scmp.lt.u32.totalorder %s970_s25, %s966_s9  ;;  %p974_p11 = scmp.lt.u32.totalorder %s966_s9, %s1282_s28 }
 0x37f   : > { %p968_p6 = pnand %p967_p13, %p1347_p0 }
 0x380   : > { %p973_p8 = por %p972_p5, %p971_p4 }
 0x381   : > { %p969_p10 = pneg %p968_p6 }
 0x382   : > { %p975_p2 = por %p974_p11, %p973_p8 }
 0x384   : > { %p976_p3 = pnand %p975_p2, %p969_p10 }
 0x386   : > { %979 = shalt.err (!%p976_p3)
}
 0x387   : > { %s1030_s11 = smov 128   ;;  %s1031_s12 = smov 8  }
 0x388   : > { %801 = dma.vmem_to_hbm [thread:$0]  (%p1347_p0), %s1284_s30, 256, %s1282_s28, %s504_s19, %s1030_s11, %s1030_s11, %s1031_s12  }
 0x389 PF: > { %s532_s6 = sand.u32 1, %s1010_s15   ;;  %p1348_p7 = scmp.ne.s32.totalorder %s1338_s22, 0 }
 0x38a   : > { %p1349_p9 = scmp.ge.s32.totalorder %s1022_s18, 2  ;;  %s533_s7 = scalar_lea.sflag [#allocation4], %s532_s6 }
 0x38c   : > { %p815_p12 = pnand %p1349_p9, %p1348_p7 }
 0x38e   : > { %1005 = dma.done.wait (!%p815_p12), %s533_s7, 256  }
 0x38f   : > { %1007 = vsyncadd (!%p815_p12), %s533_s7, 4294967040  ;;  %p18_p1 = scmp.ge.s32.totalorder %s1173_s26, 4   ;;  %s1350_s15 = smov %s1014_s16 }
 0x390   : > { %s1351_s16 = smov %s1018_s17  ;;  %s1352_s17 = smov %s1189_s14 }
 0x391   : > { %s1353_s18 = smov %s1173_s26  ;;  %20 = sbr.rel (!%p18_p1) target bundleno = 6 (0x6), region = 89 }
 0x398   :  { %538 = vsyncpa [#allocation3], 1 }
 0x399   :  { %540 = vsyncpa [#allocation3 + $0x1], 1 }
 0x39a   :  { %541 = vsyncpa [#allocation6], 1 }
 0x39b   :  { %542 = vsyncpa [#allocation4], 1 }
 0x39c   :  { %544 = vsyncpa [#allocation4 + $0x1], 1 }

</bundles_post_ra>
